<compile_context>
chip_gen: v7x
topology: tpu7x:2x2x1
jax: 0.10.0
libtpu: 0.0.40
codegen_flags: <defaults>
</compile_context>

<pallas_src>
import functools
import math

import jax
import jax.numpy as jnp
from jax.experimental import pallas as pl
from jax.experimental.pallas import tpu as pltpu

_LANE = 128
_MAX_BATCH_TILE = 2048   # a few MiB of live VMEM even with 512-wide hidden layers


def _round_up(n, m):
    return ((n + m - 1) // m) * m


def _choose_batch_tile(batch):
    """Batch tile = output lane width. Multiple of 128; >=2 grid steps when B>128."""
    if batch <= _LANE:
        return _LANE
    half = _round_up(pl.cdiv(batch, 2), _LANE)   # split so both v7x TCs get work
    return min(half, _MAX_BATCH_TILE)


# ---------------------------------------------------------------------------
# Fused MLP kernel, (feature, batch) dataflow:
#   h1 = relu(W1s^T s^T + W1a^T a^T + b1); h2 = relu(W2^T h1 + b2);
#   h3 = relu(W3^T h2 + b3);  out_row = w4 h3 + b4   -> (1, tb) lane-dense.
# ---------------------------------------------------------------------------
def _critic_kernel(*refs, has_action):
    if has_action:
        (s_ref, a_ref, w1s_ref, w1a_ref, b1_ref,
         w2_ref, b2_ref, w3_ref, b3_ref, w4_ref, b4_ref, o_ref) = refs
    else:
        (s_ref, w1s_ref, b1_ref,
         w2_ref, b2_ref, w3_ref, b3_ref, w4_ref, b4_ref, o_ref) = refs

    w1s = w1s_ref[...]
    mm_dtype = w1s.dtype          # f32 (default) or bf16 matmul operands

    # Layer 1: contract (H1, Ds) with (tb, Ds) on the feature axis -> (H1, tb).
    # No explicit transpose of the batch tile is materialized.
    h = jnp.einsum("hd,bd->hb", w1s, s_ref[...].astype(mm_dtype),
                   preferred_element_type=jnp.float32)
    if has_action:
        h = h + jnp.einsum("hd,bd->hb", w1a_ref[...],
                           a_ref[...].astype(mm_dtype),
                           preferred_element_type=jnp.float32)
    h = jnp.maximum(h + b1_ref[...], 0.0)

    h = jnp.maximum(
        jnp.dot(w2_ref[...], h.astype(mm_dtype),
                preferred_element_type=jnp.float32) + b2_ref[...], 0.0)
    h = jnp.maximum(
        jnp.dot(w3_ref[...], h.astype(mm_dtype),
                preferred_element_type=jnp.float32) + b3_ref[...], 0.0)

    # Final layer: (1, H3) @ (H3, tb) -> (1, tb); unmasked full-lane store.
    out = jnp.dot(w4_ref[...], h, preferred_element_type=jnp.float32) + b4_ref[...]
    o_ref[...] = out.astype(o_ref.dtype)


# ---------------------------------------------------------------------------
# pallas_call wrapper
# ---------------------------------------------------------------------------
@jax.jit
def _critic_forward(s, a, params):
    """s: (B, Ds) f32; a: (B, Da) f32 or None; params: packed weight dict."""
    batch, state_dim = s.shape
    has_action = a is not None

    tb = _choose_batch_tile(batch)
    num_blocks = pl.cdiv(batch, tb)      # ragged tail block allowed (no jnp.pad)
    out_w = num_blocks * tb              # multiple of 128; tail lanes are garbage

    def batch_tiled(feat):
        return pl.BlockSpec((tb, feat), lambda i: (i, 0))

    def resident(arr):
        # Whole-array block + constant index map -> fetched once, VMEM-resident.
        return pl.BlockSpec(arr.shape, lambda i: (0, 0))

    if has_action:
        weights = [params["w1sT"], params["w1aT"], params["b1"],
                   params["w2T"], params["b2"], params["w3T"], params["b3"],
                   params["w4"], params["b4"]]
        inputs = [s, a] + weights
        in_specs = ([batch_tiled(state_dim), batch_tiled(a.shape[1])]
                    + [resident(w) for w in weights])
    else:
        weights = [params["w1sT"], params["b1"],
                   params["w2T"], params["b2"], params["w3T"], params["b3"],
                   params["w4"], params["b4"]]
        inputs = [s] + weights
        in_specs = [batch_tiled(state_dim)] + [resident(w) for w in weights]

    out = pl.pallas_call(
        functools.partial(_critic_kernel, has_action=has_action),
        out_shape=jax.ShapeDtypeStruct((1, out_w), jnp.float32),
        grid=(num_blocks,),
        in_specs=in_specs,
        out_specs=pl.BlockSpec((1, tb), lambda i: (0, i)),
        compiler_params=pltpu.CompilerParams(
            dimension_semantics=("parallel",),
            vmem_limit_bytes=32 * 1024 * 1024),   # headroom for big tiles on v5e
    )(*inputs)

    # TODO(synk): downstream consumers that accept a (1, B) row could skip this
    # slice+reshape epilogue entirely.
    return out[0, :batch].reshape(batch, 1)


# ---------------------------------------------------------------------------
# Parameter init (torch.nn.Linear default: U(+/- 1/sqrt(fan_in))) + packing.
# ---------------------------------------------------------------------------
def init_critic_params_raw(key, in_dim, layers):
    """Unpadded [(W (in,out), b (1,out)), ...] matching the PyTorch module."""
    dims = [in_dim] + list(layers) + [1]
    raw = []
    for i in range(len(dims) - 1):
        key, kw, kb = jax.random.split(key, 3)
        bound = 1.0 / math.sqrt(dims[i])
        w = jax.random.uniform(kw, (dims[i], dims[i + 1]),
                               minval=-bound, maxval=bound, dtype=jnp.float32)
        b = jax.random.uniform(kb, (1, dims[i + 1]),
                               minval=-bound, maxval=bound, dtype=jnp.float32)
        raw.append((w, b))
    return raw


def pack_critic_params(raw, state_dim, action_dim, matmul_dtype=jnp.float32):
    """Pre-transpose weights (feature-major), pad hidden dims to 128, split W1."""
    (w1, b1), (w2, b2), (w3, b3), (w4, b4) = raw
    h1p, h2p, h3p = (_round_up(w.shape[1], _LANE) for w in (w1, w2, w3))

    def pad_to(x, shape):
        return jnp.pad(x, [(0, t - s) for s, t in zip(x.shape, shape)])

    w1p = pad_to(w1, (state_dim + action_dim, h1p))
    params = {
        "w1sT": w1p[:state_dim].T.astype(matmul_dtype),            # (H1, Ds)
        "b1": pad_to(b1, (1, h1p)).T,                              # (H1, 1) f32
        "w2T": pad_to(w2, (h1p, h2p)).T.astype(matmul_dtype),      # (H2, H1)
        "b2": pad_to(b2, (1, h2p)).T,                              # (H2, 1) f32
        "w3T": pad_to(w3, (h2p, h3p)).T.astype(matmul_dtype),      # (H3, H2)
        "b3": pad_to(b3, (1, h3p)).T,                              # (H3, 1) f32
        "w4": pad_to(w4.T, (1, h3p)),                              # (1, H3) f32
        "b4": b4.reshape(1, 1),                                    # (1, 1)  f32
    }
    if action_dim > 0:
        params["w1aT"] = w1p[state_dim:].T.astype(matmul_dtype)    # (H1, Da)
    return params


def critic_apply(params, s, a=None):
    """Semantics of Critic.forward: flatten s (and a), fused MLP -> (B, 1)."""
    batch = s.shape[0]
    s = jnp.asarray(s, jnp.float32).reshape(batch, -1)
    if a is not None:
        a = jnp.asarray(a, jnp.float32).reshape(batch, -1)
    return _critic_forward(s, a, params)


# Pure-JAX reference (uses the raw, unpadded parameters).
def critic_apply_ref(raw_params, s, a=None):
    batch = s.shape[0]
    x = jnp.asarray(s, jnp.float32).reshape(batch, -1)
    if a is not None:
        x = jnp.concatenate(
            [x, jnp.asarray(a, jnp.float32).reshape(batch, -1)], axis=1)
    (w1, b1), (w2, b2), (w3, b3), (w4, b4) = raw_params
    h = jnp.maximum(x @ w1 + b1, 0.0)
    h = jnp.maximum(h @ w2 + b2, 0.0)
    h = jnp.maximum(h @ w3 + b3, 0.0)
    return h @ w4 + b4


if __name__ == "__main__":
    key = jax.random.PRNGKey(0)

    state_shape = (4, 3)     # prod = 12
    action_shape = (2,)      # prod = 2
    layers = [32, 32, 16]    # constructor arg `layer`

    state_dim = int(math.prod(state_shape))
    action_dim = int(math.prod(action_shape))

    # --- state + action critic, f32, tiny batch ------------------------------
    key, k_p, k_s, k_a = jax.random.split(key, 4)
    raw = init_critic_params_raw(k_p, state_dim + action_dim, layers)
    params = pack_critic_params(raw, state_dim, action_dim)

    batch = 8
    s = jax.random.normal(k_s, (batch,) + state_shape, dtype=jnp.float32)
    a = jax.random.normal(k_a, (batch,) + action_shape, dtype=jnp.float32)

    out = jax.block_until_ready(critic_apply(params, s, a))
    assert out.shape == (batch, 1), out.shape
    ref = critic_apply_ref(raw, s, a)
    assert jnp.allclose(out, ref, atol=1e-4, rtol=1e-4), (out, ref)

    # --- ragged multi-block batch (2 grid steps, non-divisible B) ------------
    key, k_s3, k_a3 = jax.random.split(key, 3)
    batch3 = 200
    s3 = jax.random.normal(k_s3, (batch3,) + state_shape, dtype=jnp.float32)
    a3 = jax.random.normal(k_a3, (batch3,) + action_shape, dtype=jnp.float32)
    out3 = jax.block_until_ready(critic_apply(params, s3, a3))
    assert out3.shape == (batch3, 1), out3.shape
    ref3 = critic_apply_ref(raw, s3, a3)
    assert jnp.allclose(out3, ref3, atol=1e-4, rtol=1e-4)

    # --- state-only critic (module default action_shape=0) -------------------
    key, k_p2, k_s2 = jax.random.split(key, 3)
    raw2 = init_critic_params_raw(k_p2, state_dim, layers)
    params2 = pack_critic_params(raw2, state_dim, 0)
    s2 = jax.random.normal(k_s2, (batch,) + state_shape, dtype=jnp.float32)

    out2 = jax.block_until_ready(critic_apply(params2, s2))
    assert out2.shape == (batch, 1), out2.shape
    ref2 = critic_apply_ref(raw2, s2)
    assert jnp.allclose(out2, ref2, atol=1e-4, rtol=1e-4), (out2, ref2)

    # --- bf16 matmul weights (v5e/v6e/v7x option), relaxed tolerance ---------
    params_bf16 = pack_critic_params(raw, state_dim, action_dim,
                                     matmul_dtype=jnp.bfloat16)
    out_bf16 = jax.block_until_ready(critic_apply(params_bf16, s, a))
    assert jnp.allclose(out_bf16, ref, atol=2e-2, rtol=2e-2)

    print("KERNEL_OK")
</pallas_src>

<mosaic_0001>
module attributes {stable_mosaic.version = 11 : i64} {
  func.func @_critic_kernel(%arg0: i32, %arg1: memref<128x12xf32, #tpu.memory_space<vmem>>, %arg2: memref<128x2xf32, #tpu.memory_space<vmem>>, %arg3: memref<128x12xf32, #tpu.memory_space<vmem>>, %arg4: memref<128x2xf32, #tpu.memory_space<vmem>>, %arg5: memref<128x1xf32, #tpu.memory_space<vmem>>, %arg6: memref<128x128xf32, #tpu.memory_space<vmem>>, %arg7: memref<128x1xf32, #tpu.memory_space<vmem>>, %arg8: memref<128x128xf32, #tpu.memory_space<vmem>>, %arg9: memref<128x1xf32, #tpu.memory_space<vmem>>, %arg10: memref<1x128xf32, #tpu.memory_space<vmem>>, %arg11: memref<1x1xf32, #tpu.memory_space<vmem>>, %arg12: memref<1x128xf32, #tpu.memory_space<vmem>>) attributes {dimension_semantics = [#tpu.dimension_semantics<parallel>], iteration_bounds = array<i64: 1>, scalar_prefetch = 0 : i64, scratch_operands = 0 : i64, tpu.core_type = #tpu.core_type<tc>, window_params = [{transform_indices = @transform_0, window_bounds = array<i64: 128, 12>}, {transform_indices = @transform_1, window_bounds = array<i64: 128, 2>}, {pipeline_mode = #tpu.pipeline_mode<synchronous>, transform_indices = @transform_2, window_bounds = array<i64: 128, 12>}, {pipeline_mode = #tpu.pipeline_mode<synchronous>, transform_indices = @transform_3, window_bounds = array<i64: 128, 2>}, {pipeline_mode = #tpu.pipeline_mode<synchronous>, transform_indices = @transform_4, window_bounds = array<i64: 128, 1>}, {pipeline_mode = #tpu.pipeline_mode<synchronous>, transform_indices = @transform_5, window_bounds = array<i64: 128, 128>}, {pipeline_mode = #tpu.pipeline_mode<synchronous>, transform_indices = @transform_6, window_bounds = array<i64: 128, 1>}, {pipeline_mode = #tpu.pipeline_mode<synchronous>, transform_indices = @transform_7, window_bounds = array<i64: 128, 128>}, {pipeline_mode = #tpu.pipeline_mode<synchronous>, transform_indices = @transform_8, window_bounds = array<i64: 128, 1>}, {pipeline_mode = #tpu.pipeline_mode<synchronous>, transform_indices = @transform_9, window_bounds = array<i64: 1, 128>}, {pipeline_mode = #tpu.pipeline_mode<synchronous>, transform_indices = @transform_10, window_bounds = array<i64: 1, 1>}, {transform_indices = @transform_11, window_bounds = array<i64: 1, 128>}]} {
    %c0 = arith.constant 0 : index
    %c0_0 = arith.constant 0 : index
    %0 = vector.load %arg3[%c0, %c0_0] : memref<128x12xf32, #tpu.memory_space<vmem>>, vector<128x12xf32>
    %c0_1 = arith.constant 0 : index
    %c0_2 = arith.constant 0 : index
    %1 = vector.load %arg1[%c0_1, %c0_2] : memref<128x12xf32, #tpu.memory_space<vmem>>, vector<128x12xf32>
    "tpu.trace_start"() <{level = 10 : i32, message = "hd,bd->hb"}> : () -> ()
    %cst = arith.constant dense<0.000000e+00> : vector<128x128xf32>
    %2 = tpu.matmul %0, %1, %cst {dimension_numbers = #tpu.dot_dimension_numbers<[1], [1], [0], [0], [0, 0, 1, 0], [], []>} : vector<128x12xf32>, vector<128x12xf32>, vector<128x128xf32> -> vector<128x128xf32>
    "tpu.trace_stop"() : () -> ()
    %c0_3 = arith.constant 0 : index
    %c0_4 = arith.constant 0 : index
    %3 = vector.load %arg4[%c0_3, %c0_4] : memref<128x2xf32, #tpu.memory_space<vmem>>, vector<128x2xf32>
    %c0_5 = arith.constant 0 : index
    %c0_6 = arith.constant 0 : index
    %4 = vector.load %arg2[%c0_5, %c0_6] : memref<128x2xf32, #tpu.memory_space<vmem>>, vector<128x2xf32>
    "tpu.trace_start"() <{level = 10 : i32, message = "hd,bd->hb"}> : () -> ()
    %cst_7 = arith.constant dense<0.000000e+00> : vector<128x128xf32>
    %5 = tpu.matmul %3, %4, %cst_7 {dimension_numbers = #tpu.dot_dimension_numbers<[1], [1], [0], [0], [0, 0, 1, 0], [], []>} : vector<128x2xf32>, vector<128x2xf32>, vector<128x128xf32> -> vector<128x128xf32>
    "tpu.trace_stop"() : () -> ()
    %6 = arith.addf %2, %5 : vector<128x128xf32>
    %c0_8 = arith.constant 0 : index
    %c0_9 = arith.constant 0 : index
    %7 = vector.load %arg5[%c0_8, %c0_9] : memref<128x1xf32, #tpu.memory_space<vmem>>, vector<128x1xf32>
    %8 = vector.broadcast %7 : vector<128x1xf32> to vector<128x128xf32>
    %9 = arith.addf %6, %8 : vector<128x128xf32>
    %cst_10 = arith.constant 0.000000e+00 : f32
    %10 = vector.broadcast %cst_10 : f32 to vector<128x128xf32>
    %11 = arith.maximumf %9, %10 : vector<128x128xf32>
    %c0_11 = arith.constant 0 : index
    %c0_12 = arith.constant 0 : index
    %12 = vector.load %arg6[%c0_11, %c0_12] : memref<128x128xf32, #tpu.memory_space<vmem>>, vector<128x128xf32>
    %cst_13 = arith.constant dense<0.000000e+00> : vector<128x128xf32>
    %13 = tpu.matmul %12, %11, %cst_13 {dimension_numbers = #tpu.dot_dimension_numbers<[1], [0], [0], [1], [0, 0, 1, 1], [], []>} : vector<128x128xf32>, vector<128x128xf32>, vector<128x128xf32> -> vector<128x128xf32>
    %c0_14 = arith.constant 0 : index
    %c0_15 = arith.constant 0 : index
    %14 = vector.load %arg7[%c0_14, %c0_15] : memref<128x1xf32, #tpu.memory_space<vmem>>, vector<128x1xf32>
    %15 = vector.broadcast %14 : vector<128x1xf32> to vector<128x128xf32>
    %16 = arith.addf %13, %15 : vector<128x128xf32>
    %cst_16 = arith.constant 0.000000e+00 : f32
    %17 = vector.broadcast %cst_16 : f32 to vector<128x128xf32>
    %18 = arith.maximumf %16, %17 : vector<128x128xf32>
    %c0_17 = arith.constant 0 : index
    %c0_18 = arith.constant 0 : index
    %19 = vector.load %arg8[%c0_17, %c0_18] : memref<128x128xf32, #tpu.memory_space<vmem>>, vector<128x128xf32>
    %cst_19 = arith.constant dense<0.000000e+00> : vector<128x128xf32>
    %20 = tpu.matmul %19, %18, %cst_19 {dimension_numbers = #tpu.dot_dimension_numbers<[1], [0], [0], [1], [0, 0, 1, 1], [], []>} : vector<128x128xf32>, vector<128x128xf32>, vector<128x128xf32> -> vector<128x128xf32>
    %c0_20 = arith.constant 0 : index
    %c0_21 = arith.constant 0 : index
    %21 = vector.load %arg9[%c0_20, %c0_21] : memref<128x1xf32, #tpu.memory_space<vmem>>, vector<128x1xf32>
    %22 = vector.broadcast %21 : vector<128x1xf32> to vector<128x128xf32>
    %23 = arith.addf %20, %22 : vector<128x128xf32>
    %cst_22 = arith.constant 0.000000e+00 : f32
    %24 = vector.broadcast %cst_22 : f32 to vector<128x128xf32>
    %25 = arith.maximumf %23, %24 : vector<128x128xf32>
    %c0_23 = arith.constant 0 : index
    %c0_24 = arith.constant 0 : index
    %26 = vector.load %arg10[%c0_23, %c0_24] : memref<1x128xf32, #tpu.memory_space<vmem>>, vector<1x128xf32>
    %cst_25 = arith.constant dense<0.000000e+00> : vector<1x128xf32>
    %27 = tpu.matmul %26, %25, %cst_25 {dimension_numbers = #tpu.dot_dimension_numbers<[1], [0], [0], [1], [0, 0, 1, 1], [], []>} : vector<1x128xf32>, vector<128x128xf32>, vector<1x128xf32> -> vector<1x128xf32>
    %c0_26 = arith.constant 0 : index
    %c0_27 = arith.constant 0 : index
    %28 = vector.load %arg11[%c0_26, %c0_27] : memref<1x1xf32, #tpu.memory_space<vmem>>, vector<1x1xf32>
    %29 = vector.broadcast %28 : vector<1x1xf32> to vector<1x128xf32>
    %30 = arith.addf %27, %29 : vector<1x128xf32>
    %c0_28 = arith.constant 0 : index
    %c0_29 = arith.constant 0 : index
    %31 = vector.load %arg12[%c0_28, %c0_29] : memref<1x128xf32, #tpu.memory_space<vmem>>, vector<1x128xf32>
    tpu.vector_store %arg12[%c0_28, %c0_29], %30 {strides = array<i32>} : memref<1x128xf32, #tpu.memory_space<vmem>>, vector<1x128xf32>,
    return
  }
  func.func @transform_0(%arg0: i32) -> (i32, i32) {
    %c0_i32 = arith.constant 0 : i32
    %c0_i32_0 = arith.constant 0 : i32
    return %arg0, %c0_i32 : i32, i32
  }
  func.func @transform_1(%arg0: i32) -> (i32, i32) {
    %c0_i32 = arith.constant 0 : i32
    %c0_i32_0 = arith.constant 0 : i32
    return %arg0, %c0_i32 : i32, i32
  }
  func.func @transform_2(%arg0: i32) -> (i32, i32) {
    %c0_i32 = arith.constant 0 : i32
    %c0_i32_0 = arith.constant 0 : i32
    %c0_i32_1 = arith.constant 0 : i32
    return %c0_i32, %c0_i32_0 : i32, i32
  }
  func.func @transform_3(%arg0: i32) -> (i32, i32) {
    %c0_i32 = arith.constant 0 : i32
    %c0_i32_0 = arith.constant 0 : i32
    %c0_i32_1 = arith.constant 0 : i32
    return %c0_i32, %c0_i32_0 : i32, i32
  }
  func.func @transform_4(%arg0: i32) -> (i32, i32) {
    %c0_i32 = arith.constant 0 : i32
    %c0_i32_0 = arith.constant 0 : i32
    %c0_i32_1 = arith.constant 0 : i32
    return %c0_i32, %c0_i32_0 : i32, i32
  }
  func.func @transform_5(%arg0: i32) -> (i32, i32) {
    %c0_i32 = arith.constant 0 : i32
    %c0_i32_0 = arith.constant 0 : i32
    %c0_i32_1 = arith.constant 0 : i32
    return %c0_i32, %c0_i32_0 : i32, i32
  }
  func.func @transform_6(%arg0: i32) -> (i32, i32) {
    %c0_i32 = arith.constant 0 : i32
    %c0_i32_0 = arith.constant 0 : i32
    %c0_i32_1 = arith.constant 0 : i32
    return %c0_i32, %c0_i32_0 : i32, i32
  }
  func.func @transform_7(%arg0: i32) -> (i32, i32) {
    %c0_i32 = arith.constant 0 : i32
    %c0_i32_0 = arith.constant 0 : i32
    %c0_i32_1 = arith.constant 0 : i32
    return %c0_i32, %c0_i32_0 : i32, i32
  }
  func.func @transform_8(%arg0: i32) -> (i32, i32) {
    %c0_i32 = arith.constant 0 : i32
    %c0_i32_0 = arith.constant 0 : i32
    %c0_i32_1 = arith.constant 0 : i32
    return %c0_i32, %c0_i32_0 : i32, i32
  }
  func.func @transform_9(%arg0: i32) -> (i32, i32) {
    %c0_i32 = arith.constant 0 : i32
    %c0_i32_0 = arith.constant 0 : i32
    %c0_i32_1 = arith.constant 0 : i32
    return %c0_i32, %c0_i32_0 : i32, i32
  }
  func.func @transform_10(%arg0: i32) -> (i32, i32) {
    %c0_i32 = arith.constant 0 : i32
    %c0_i32_0 = arith.constant 0 : i32
    %c0_i32_1 = arith.constant 0 : i32
    return %c0_i32, %c0_i32_0 : i32, i32
  }
  func.func @transform_11(%arg0: i32) -> (i32, i32) {
    %c0_i32 = arith.constant 0 : i32
    %c0_i32_0 = arith.constant 0 : i32
    return %c0_i32, %arg0 : i32, i32
  }
}

</mosaic_0001>

<bundles_post_ra>
// kernel: _critic_forward.1
= control target key start
LH: loop header
LB: loop body
LE: loop exit
PB: predicated region body
PF: predicated region fallthrough
CT: control target
= control target key end

     0   :  { %vm104_vm0 = vcmask 15360   ;;  %v2022_v3 = vmov 0   ;;  %vm346_vm2 = vcmask 97280   ;;  %vm2024_vm4 = vmmov 0   ;;  %s2643_s1 = inlined_call_operand.vmem [shape: f32[8,2], index: 1, kind: input, shape index: {}]   ;;  %s2644_s3 = inlined_call_operand.vmem [shape: f32[128,2], index: 3, kind: input, shape index: {}]   ;;  %s2645_s4 = inlined_call_operand.vmem [shape: f32[128,1], index: 4, kind: input, shape index: {}]   ;;  %s2646_s10 = inlined_call_operand.<no memory space> [shape: f32[1,1], index: 10, kind: input, shape index: {}]   ;;  %s2647_s6 = inlined_call_operand.vmem [shape: f32[128,1], index: 6, kind: input, shape index: {}]   ;;  %s2648_s0 = inlined_call_operand.vmem [shape: f32[8,12], index: 0, kind: input, shape index: {}]   ;;  %s2649_s8 = inlined_call_operand.vmem [shape: f32[128,1], index: 8, kind: input, shape index: {}]   ;;  %s2650_s2 = inlined_call_operand.vmem [shape: f32[128,12], index: 2, kind: input, shape index: {}]   ;;  %s2651_s5 = inlined_call_operand.vmem [shape: f32[128,128], index: 5, kind: input, shape index: {}]   ;;  %s2652_s7 = inlined_call_operand.vmem [shape: f32[128,128], index: 7, kind: input, shape index: {}]   ;;  %s2653_s9 = inlined_call_operand.vmem [shape: f32[1,128], index: 9, kind: input, shape index: {}]   ;;  %s2654_s11 = inlined_call_operand.vmem [shape: f32[1,128], index: 11, kind: output, shape index: {}]  }
   0x1   :  { %v88_v0 = vld [vmem:[%s2643_s1] sm:$0xff]  ;;  %v89_v1 = vld [vmem:[%s2643_s1 + $0x8] sm:$0xff]  ;;  %vm2094_vm1 = vmpackc.low %vm104_vm0, %vm104_vm0  ;;  %2020 = vset.pattern.permute.xlu0 %v2022_v3  ;;  %2021 = vset.pattern.permute.xlu1 %v2022_v3  ;;  %v16_v31 = vstv %s2646_s10 }
   0x2   :  { %v1816_v4 = vpack.c.bf16 %v89_v1, %v88_v0  ;;  %v90_v5 = vld [vmem:[%s2643_s1 + $0x10] sm:$0xff]  ;;  %v91_v6 = vld [vmem:[%s2643_s1 + $0x18] sm:$0xff]  ;;  %v72_v8 = vld [vmem:[%s2644_s3] sm:$0xff]  ;;  %17 = vst [vmem:[#allocation2] sm:$0x1] %v16_v31 }
   0x3   :  { %v1822_v7 = vpack.c.bf16 %v91_v6, %v90_v5  ;;  %v92_v9 = vld [vmem:[%s2643_s1 + $0x20] sm:$0xff]  ;;  %v93_v10 = vld [vmem:[%s2643_s1 + $0x28] sm:$0xff]  ;;  %1589 = vmatprep.mubr.msk.f32.mxu0 %vm104_vm0, %v72_v8  ;;  %v94_v12 = vld [vmem:[%s2643_s1 + $0x30] sm:$0xff] }
   0x4   :  { %1818 = vmatprep.subr.msk.bf16.mxu0 %vm2094_vm1, %v1816_v4  ;;  %v1828_v11 = vpack.c.bf16 %v93_v10, %v92_v9  ;;  %v95_v13 = vld [vmem:[%s2643_s1 + $0x38] sm:$0xff]  ;;  %v588_v14 = vld [vmem:[%s2645_s4] sm:$0xff]  ;;  %v589_v15 = vld [vmem:[%s2645_s4 + $0x8] sm:$0xff] }
   0x5   :  { %1821 = vmatpush3.bf16.xpose.msk.msra.mxu0 %vm2094_vm1, %v1816_v4  ;;  %606 = vperm.xlu0 %2020, %v588_v14   ;;  %v590_v16 = vld [vmem:[%s2645_s4 + $0x10] sm:$0xff]  ;;  %v1834_v17 = vpack.c.bf16 %v95_v13, %v94_v12  ;;  %v591_v18 = vld [vmem:[%s2645_s4 + $0x18] sm:$0xff]  ;;  %v592_v19 = vld [vmem:[%s2645_s4 + $0x20] sm:$0xff] }
   0x6   :  { %1824 = vmatprep.subr.msk.bf16.mxu0 %vm2094_vm1, %v1822_v7  ;;  %616 = vperm.xlu1 %2021, %v590_v16   ;;  %v96_v20 = vld [vmem:[%s2643_s1 + $0x40] sm:$0xff]  ;;  %v97_v21 = vld [vmem:[%s2643_s1 + $0x48] sm:$0xff]  ;;  %v594_v23 = vld [vmem:[%s2645_s4 + $0x30] sm:$0xff] }
   0x7   :  { %v593_v22 = vld [vmem:[%s2645_s4 + $0x28] sm:$0xff]  ;;  %v1840_v24 = vpack.c.bf16 %v97_v21, %v96_v20  ;;  %v595_v25 = vld [vmem:[%s2645_s4 + $0x38] sm:$0xff]  ;;  %v596_v26 = vld [vmem:[%s2645_s4 + $0x40] sm:$0xff] }
   0x8   :  { %v98_v27 = vld [vmem:[%s2643_s1 + $0x50] sm:$0xff]  ;;  %v99_v28 = vld [vmem:[%s2643_s1 + $0x58] sm:$0xff]  ;;  %v597_v29 = vld [vmem:[%s2645_s4 + $0x48] sm:$0xff] }
   0x9   :  { %611 = vperm.xlu0 %2020, %v589_v15   ;;  %v598_v30 = vld [vmem:[%s2645_s4 + $0x50] sm:$0xff]  ;;  %v1846_v32 = vpack.c.bf16 %v99_v28, %v98_v27  ;;  %v599_v33 = vld [vmem:[%s2645_s4 + $0x58] sm:$0xff]  ;;  %v600_v34 = vld [vmem:[%s2645_s4 + $0x60] sm:$0xff] }
   0xa   :  { %621 = vperm.xlu1 %2021, %v591_v18   ;;  %v100_v35 = vld [vmem:[%s2643_s1 + $0x60] sm:$0xff]  ;;  %v101_v36 = vld [vmem:[%s2643_s1 + $0x68] sm:$0xff]  ;;  %v602_v38 = vld [vmem:[%s2645_s4 + $0x70] sm:$0xff] }
   0xb   :  { %v601_v37 = vld [vmem:[%s2645_s4 + $0x68] sm:$0xff]  ;;  %v1852_v39 = vpack.c.bf16 %v101_v36, %v100_v35  ;;  %v603_v40 = vld [vmem:[%s2645_s4 + $0x78] sm:$0xff]  ;;  %v732_v41 = vld [vmem:[%s2647_s6] sm:$0xff] }
   0xc   :  { %v102_v42 = vld [vmem:[%s2643_s1 + $0x70] sm:$0xff]  ;;  %v103_v43 = vld [vmem:[%s2643_s1 + $0x78] sm:$0xff]  ;;  %v733_v44 = vld [vmem:[%s2647_s6 + $0x8] sm:$0xff] }
   0xd   :  { %1827 = vmatpush3.bf16.xpose.msk.msra.mxu0 %vm2094_vm1, %v1822_v7  ;;  %626 = vperm.xlu0 %2020, %v592_v19   ;;  %v734_v45 = vld [vmem:[%s2647_s6 + $0x10] sm:$0xff]  ;;  %v1858_v46 = vpack.c.bf16 %v103_v43, %v102_v42  ;;  %v735_v47 = vld [vmem:[%s2647_s6 + $0x18] sm:$0xff]  ;;  %v736_v48 = vld [vmem:[%s2647_s6 + $0x20] sm:$0xff] }
   0xe   :  { %1830 = vmatprep.subr.msk.bf16.mxu0 %vm2094_vm1, %v1828_v11  ;;  %631 = vperm.xlu1 %2021, %v593_v22   ;;  %v56_v49 = vld [vmem:[%s2648_s0] sm:$0xff]  ;;  %v57_v50 = vld [vmem:[%s2648_s0 + $0x8] sm:$0xff]  ;;  %v738_v52 = vld [vmem:[%s2647_s6 + $0x30] sm:$0xff] }
   0xf   :  { %v737_v51 = vld [vmem:[%s2647_s6 + $0x28] sm:$0xff]  ;;  %v1864_v53 = vpack.c.bf16 %v57_v50, %v56_v49  ;;  %vm2254_vm3 = vmpackc.low %vm346_vm2, %vm346_vm2  ;;  %v739_v55 = vld [vmem:[%s2647_s6 + $0x38] sm:$0xff] }
  0x10   :  { %v740_v56 = vld [vmem:[%s2647_s6 + $0x40] sm:$0xff]  ;;  %v58_v57 = vld [vmem:[%s2648_s0 + $0x10] sm:$0xff]  ;;  %v59_v58 = vld [vmem:[%s2648_s0 + $0x18] sm:$0xff] }
  0x11   :  { %636 = vperm.xlu0 %2020, %v594_v23   ;;  %v741_v59 = vld [vmem:[%s2647_s6 + $0x48] sm:$0xff]  ;;  %v742_v61 = vld [vmem:[%s2647_s6 + $0x50] sm:$0xff]  ;;  %v1870_v62 = vpack.c.bf16 %v59_v58, %v58_v57  ;;  %v743_v0 = vld [vmem:[%s2647_s6 + $0x58] sm:$0xff] }
  0x12   :  { %641 = vperm.xlu1 %2021, %v595_v25   ;;  %v73_v60 = vld [vmem:[%s2644_s3 + $0x8] sm:$0xff]  ;;  %v74_v63 = vld [vmem:[%s2644_s3 + $0x10] sm:$0xff]  ;;  %v75_v1 = vld [vmem:[%s2644_s3 + $0x18] sm:$0xff] }
  0x13   :  { %v744_v2 = vld [vmem:[%s2647_s6 + $0x60] sm:$0xff]  ;;  %v61_v5 = vld [vmem:[%s2648_s0 + $0x28] sm:$0xff]  ;;  %v746_v8 = vld [vmem:[%s2647_s6 + $0x70] sm:$0xff] }
  0x14   :  { %v76_v3 = vld [vmem:[%s2644_s3 + $0x20] sm:$0xff]  ;;  %v745_v6 = vld [vmem:[%s2647_s6 + $0x68] sm:$0xff]  ;;  %v78_v10 = vld [vmem:[%s2644_s3 + $0x30] sm:$0xff] }
  0x15   :  { %1833 = vmatpush3.bf16.xpose.msk.msra.mxu0 %vm2094_vm1, %v1828_v11  ;;  %646 = vperm.xlu0 %2020, %v596_v26   ;;  %v60_v4 = vld [vmem:[%s2648_s0 + $0x20] sm:$0xff]  ;;  %v77_v7 = vld [vmem:[%s2644_s3 + $0x28] sm:$0xff]  ;;  %v747_v11 = vld [vmem:[%s2647_s6 + $0x78] sm:$0xff] }
  0x16   :  { %1836 = vmatprep.subr.msk.bf16.mxu0 %vm2094_vm1, %v1834_v17  ;;  %651 = vperm.xlu1 %2021, %v597_v29   ;;  %v1876_v9 = vpack.c.bf16 %v61_v5, %v60_v4  ;;  %v79_v12 = vld [vmem:[%s2644_s3 + $0x38] sm:$0xff]  ;;  %v1005_v13 = vld [vmem:[%s2649_s8] sm:$0xff]  ;;  %v62_v15 = vld [vmem:[%s2648_s0 + $0x30] sm:$0xff] }
  0x17   :  { %v80_v14 = vld [vmem:[%s2644_s3 + $0x40] sm:$0xff]  ;;  %v63_v16 = vld [vmem:[%s2648_s0 + $0x38] sm:$0xff]  ;;  %v81_v18 = vld [vmem:[%s2644_s3 + $0x48] sm:$0xff] }
  0x18   :  { %v1007_v19 = vld [vmem:[%s2649_s8 + $0x10] sm:$0xff]  ;;  %v1882_v20 = vpack.c.bf16 %v63_v16, %v62_v15  ;;  %v1008_v22 = vld [vmem:[%s2649_s8 + $0x18] sm:$0xff]  ;;  %v84_v25 = vld [vmem:[%s2644_s3 + $0x60] sm:$0xff] }
  0x19   :  { %656 = vperm.xlu0 %2020, %v598_v30   ;;  %v82_v21 = vld [vmem:[%s2644_s3 + $0x50] sm:$0xff]  ;;  %v83_v23 = vld [vmem:[%s2644_s3 + $0x58] sm:$0xff]  ;;  %v64_v26 = vld [vmem:[%s2648_s0 + $0x40] sm:$0xff] }
  0x1a   :  { %661 = vperm.xlu1 %2021, %v599_v33   ;;  %v65_v27 = vld [vmem:[%s2648_s0 + $0x48] sm:$0xff]  ;;  %v1011_v30 = vld [vmem:[%s2649_s8 + $0x30] sm:$0xff]  ;;  %v1012_v33 = vld [vmem:[%s2649_s8 + $0x38] sm:$0xff] }
  0x1b   :  { %v1010_v28 = vld [vmem:[%s2649_s8 + $0x28] sm:$0xff]  ;;  %v1888_v31 = vpack.c.bf16 %v65_v27, %v64_v26  ;;  %v1013_v35 = vld [vmem:[%s2649_s8 + $0x40] sm:$0xff]  ;;  %v1016_v42 = vld [vmem:[%s2649_s8 + $0x58] sm:$0xff] }
  0x1c   :  { %v85_v29 = vld [vmem:[%s2644_s3 + $0x68] sm:$0xff]  ;;  %v40_v36 = vld [vmem:[%s2650_s2] sm:$0xff]  ;;  %v1020_v49 = vld [vmem:[%s2649_s8 + $0x78] sm:$0xff] }
  0x1d   :  { %1839 = vmatpush3.bf16.xpose.msk.msra.mxu0 %vm2094_vm1, %v1834_v17  ;;  %666 = vperm.xlu0 %2020, %v600_v34   ;;  %v1006_v17 = vld [vmem:[%s2649_s8 + $0x8] sm:$0xff]  ;;  %v87_v34 = vld [vmem:[%s2644_s3 + $0x78] sm:$0xff]  ;;  %v1017_v43 = vld [vmem:[%s2649_s8 + $0x60] sm:$0xff] }
  0x1e   :  { %1842 = vmatprep.subr.msk.bf16.mxu0 %vm2094_vm1, %v1840_v24  ;;  %671 = vperm.xlu1 %2021, %v601_v37   ;;  %v66_v37 = vld [vmem:[%s2648_s0 + $0x50] sm:$0xff]  ;;  %v1263_v50 = vld [vmem:[#allocation2] sm:$0x1]  ;;  %v43_v57 = vld [vmem:[%s2650_s2 + $0x18] sm:$0xff] }
  0x1f   :  { %v44_v54 = vld [vmem:[%s2650_s2 + $0x20] sm:$0xff]  ;;  %v45_v58 = vld [vmem:[%s2650_s2 + $0x28] sm:$0xff]  ;;  %v55_v4 = vld [vmem:[%s2650_s2 + $0x78] sm:$0xff] }
  0x20   :  { %v716_v5 = vld [vmem:[%s2651_s5] sm:$0xff] }
  0x21   :  { %676 = vperm.xlu0 %2020, %v602_v38   ;;  %v67_v38 = vld [vmem:[%s2648_s0 + $0x58] sm:$0xff]  ;;  %1701 = vmatprep.mubr.f32.mxu1 %v716_v5 }
  0x22   :  { %681 = vperm.xlu1 %2021, %v603_v40   ;;  %v1015_v40 = vld [vmem:[%s2649_s8 + $0x50] sm:$0xff] }
  0x25   :  { %1845 = vmatpush3.bf16.xpose.msk.msra.mxu0 %vm2094_vm1, %v1840_v24  ;;  %750 = vperm.xlu0 %2020, %v732_v41   ;;  %v1009_v24 = vld [vmem:[%s2649_s8 + $0x20] sm:$0xff]  ;;  %v1894_v41 = vpack.c.bf16 %v67_v38, %v66_v37 }
  0x26   :  { %1848 = vmatprep.subr.msk.bf16.mxu0 %vm2094_vm1, %v1846_v32  ;;  %755 = vperm.xlu1 %2021, %v733_v44   ;;  %v68_v44 = vld [vmem:[%s2648_s0 + $0x60] sm:$0xff] }
  0x29   :  { %760 = vperm.xlu0 %2020, %v734_v45   ;;  %v69_v45 = vld [vmem:[%s2648_s0 + $0x68] sm:$0xff] }
  0x2a   :  { %765 = vperm.xlu1 %2021, %v735_v47   ;;  %v1019_v47 = vld [vmem:[%s2649_s8 + $0x70] sm:$0xff] }
  0x2d   :  { %1851 = vmatpush3.bf16.xpose.msk.msra.mxu0 %vm2094_vm1, %v1846_v32  ;;  %770 = vperm.xlu0 %2020, %v736_v48   ;;  %v86_v32 = vld [vmem:[%s2644_s3 + $0x70] sm:$0xff]  ;;  %v1900_v48 = vpack.c.bf16 %v69_v45, %v68_v44 }
  0x2e   :  { %1854 = vmatprep.subr.msk.bf16.mxu0 %vm2094_vm1, %v1852_v39  ;;  %775 = vperm.xlu1 %2021, %v737_v51   ;;  %v70_v51 = vld [vmem:[%s2648_s0 + $0x70] sm:$0xff] }
  0x31   :  { %780 = vperm.xlu0 %2020, %v738_v52   ;;  %v71_v52 = vld [vmem:[%s2648_s0 + $0x78] sm:$0xff] }
  0x32   :  { %785 = vperm.xlu1 %2021, %v739_v55   ;;  %v41_v55 = vld [vmem:[%s2650_s2 + $0x8] sm:$0xff] }
  0x35   :  { %1857 = vmatpush3.bf16.xpose.msk.msra.mxu0 %vm2094_vm1, %v1852_v39  ;;  %790 = vperm.xlu0 %2020, %v740_v56   ;;  %v1014_v39 = vld [vmem:[%s2649_s8 + $0x48] sm:$0xff]  ;;  %v42_v56 = vld [vmem:[%s2650_s2 + $0x10] sm:$0xff] }
  0x36   :  { %1860 = vmatprep.subr.msk.bf16.mxu0 %vm2094_vm1, %v1858_v46  ;;  %795 = vperm.xlu1 %2021, %v741_v59   ;;  %v46_v59 = vld [vmem:[%s2650_s2 + $0x30] sm:$0xff] }
  0x39   :  { %800 = vperm.xlu0 %2020, %v742_v61   ;;  %v48_v61 = vld [vmem:[%s2650_s2 + $0x40] sm:$0xff] }
  0x3a   :  { %805 = vperm.xlu1 %2021, %v743_v0   ;;  %v51_v0 = vld [vmem:[%s2650_s2 + $0x58] sm:$0xff] }
  0x3d   :  { %1863 = vmatpush3.bf16.xpose.msk.msra.mxu0 %vm2094_vm1, %v1858_v46  ;;  %810 = vperm.xlu0 %2020, %v744_v2   ;;  %v1018_v46 = vld [vmem:[%s2649_s8 + $0x68] sm:$0xff] }
  0x3e   :  { %1866 = vmatprep.subr.msk.bf16.mxu0 %vm2254_vm3, %v1864_v53  ;;  %815 = vperm.xlu1 %2021, %v745_v6   ;;  %v53_v2 = vld [vmem:[%s2650_s2 + $0x68] sm:$0xff] }
  0x41   :  { %820 = vperm.xlu0 %2020, %v746_v8  }
  0x42   :  { %825 = vperm.xlu1 %2021, %v747_v11  }
  0x44   :  { %1590 = vmatmul.mubr.msk.f32.vlgmr.msra.gmra.mrb[0].mxu0 %vm104_vm0, %v73_v60  ;;  %v47_v60 = vld [vmem:[%s2650_s2 + $0x38] sm:$0xff] }
  0x45   :  { %1869 = vmatpush3.bf16.xpose.msk.msra.mxu0 %vm2254_vm3, %v1864_v53  ;;  %1592 = vmatprep.mubr.msk.f32.mxu0 %vm104_vm0, %v74_v63  ;;  %v1906_v53 = vpack.c.bf16 %v71_v52, %v70_v51  ;;  %v50_v63 = vld [vmem:[%s2650_s2 + $0x50] sm:$0xff] }
  0x46   :  { %1872 = vmatprep.subr.msk.bf16.mxu0 %vm2254_vm3, %v1870_v62  ;;  %1023 = vperm.xlu0 %2020, %v1005_v13  }
  0x47   :  { %1028 = vperm.xlu1 %2021, %v1006_v17  }
  0x48   :  { %1593 = vmatmul.mubr.msk.f32.gmra.mrb[2].mxu0 %vm104_vm0, %v75_v1  ;;  %v52_v1 = vld [vmem:[%s2650_s2 + $0x60] sm:$0xff] }
  0x49   :  { %1595 = vmatprep.mubr.msk.f32.mxu0 %vm104_vm0, %v76_v3  ;;  %v54_v3 = vld [vmem:[%s2650_s2 + $0x70] sm:$0xff] }
  0x4a   :  { %1033 = vperm.xlu0 %2020, %v1007_v19  }
  0x4b   :  { %1038 = vperm.xlu1 %2021, %v1008_v22  }
  0x4c   :  { %1596 = vmatmul.mubr.msk.f32.gmra.mrb[4].mxu0 %vm104_vm0, %v77_v7 }
  0x4d   :  { %1875 = vmatpush3.bf16.xpose.msk.msra.mxu0 %vm2254_vm3, %v1870_v62  ;;  %1598 = vmatprep.mubr.msk.f32.mxu0 %vm104_vm0, %v78_v10  ;;  %v49_v62 = vld [vmem:[%s2650_s2 + $0x48] sm:$0xff] }
  0x4e   :  { %1878 = vmatprep.subr.msk.bf16.mxu0 %vm2254_vm3, %v1876_v9  ;;  %1043 = vperm.xlu0 %2020, %v1009_v24  }
  0x4f   :  { %1048 = vperm.xlu1 %2021, %v1010_v28  }
  0x50   :  { %1599 = vmatmul.mubr.msk.f32.gmra.mrb[6].mxu0 %vm104_vm0, %v79_v12 }
  0x51   :  { %1601 = vmatprep.mubr.msk.f32.mxu0 %vm104_vm0, %v80_v14 }
  0x52   :  { %1053 = vperm.xlu0 %2020, %v1011_v30  }
  0x53   :  { %1058 = vperm.xlu1 %2021, %v1012_v33  }
  0x54   :  { %1602 = vmatmul.mubr.msk.f32.gmra.mrb[8].mxu0 %vm104_vm0, %v81_v18 }
  0x55   :  { %1881 = vmatpush3.bf16.xpose.msk.msra.mxu0 %vm2254_vm3, %v1876_v9  ;;  %1604 = vmatprep.mubr.msk.f32.mxu0 %vm104_vm0, %v82_v21 }
  0x56   :  { %1884 = vmatprep.subr.msk.bf16.mxu0 %vm2254_vm3, %v1882_v20  ;;  %1063 = vperm.xlu0 %2020, %v1013_v35  }
  0x57   :  { %1068 = vperm.xlu1 %2021, %v1014_v39  }
  0x58   :  { %1605 = vmatmul.mubr.msk.f32.gmra.mrb[10].mxu0 %vm104_vm0, %v83_v23 }
  0x59   :  { %1607 = vmatprep.mubr.msk.f32.mxu0 %vm104_vm0, %v84_v25 }
  0x5a   :  { %1073 = vperm.xlu0 %2020, %v1015_v40  }
  0x5b   :  { %1078 = vperm.xlu1 %2021, %v1016_v42  }
  0x5c   :  { %1608 = vmatmul.mubr.msk.f32.gmra.mrb[12].mxu0 %vm104_vm0, %v85_v29 }
  0x5d   :  { %1887 = vmatpush3.bf16.xpose.msk.msra.mxu0 %vm2254_vm3, %v1882_v20  ;;  %1610 = vmatprep.mubr.msk.f32.mxu0 %vm104_vm0, %v86_v32 }
  0x5e   :  { %1890 = vmatprep.subr.msk.bf16.mxu0 %vm2254_vm3, %v1888_v31  ;;  %1083 = vperm.xlu0 %2020, %v1017_v43  }
  0x5f   :  { %1088 = vperm.xlu1 %2021, %v1018_v46  }
  0x60   :  { %1611 = vmatmul.mubr.msk.f32.gmra.mrb[14].mxu0 %vm104_vm0, %v87_v34 }
  0x61   :  { %1645 = vmatprep.mubr.msk.f32.mxu0 %vm346_vm2, %v40_v36 }
  0x62   :  { %1093 = vperm.xlu0 %2020, %v1019_v47  }
  0x63   :  { %1098 = vperm.xlu1 %2021, %v1020_v49  }
  0x65   :  { %1893 = vmatpush3.bf16.xpose.msk.msra.mxu0 %vm2254_vm3, %v1888_v31 }
  0x66   :  { %1896 = vmatprep.subr.msk.bf16.mxu0 %vm2254_vm3, %v1894_v41  ;;  %1266 = vperm.xlu0 %2020, %v1263_v50  }
  0x6d   :  { %1899 = vmatpush3.bf16.xpose.msk.msra.mxu0 %vm2254_vm3, %v1894_v41 }
  0x6e   :  { %1902 = vmatprep.subr.msk.bf16.mxu0 %vm2254_vm3, %v1900_v48 }
  0x75   :  { %1905 = vmatpush3.bf16.xpose.msk.msra.mxu0 %vm2254_vm3, %v1900_v48 }
  0x76   :  { %1908 = vmatprep.subr.msk.bf16.mxu0 %vm2254_vm3, %v1906_v53 }
  0x7d   :  { %1911 = vmatpush3.bf16.xpose.msk.msra.mxu0 %vm2254_vm3, %v1906_v53 }
  0x84   :  { %1646 = vmatmul.mubr.msk.f32.vlgmr.msra.gmra.mrb[0].mxu0 %vm346_vm2, %v41_v55  ;;  %v607_v7 = vpop.permute.xlu0 %606 }
  0x85   :  { %1648 = vmatprep.mubr.msk.f32.mxu0 %vm346_vm2, %v42_v56  ;;  %v617_v6 = vpop.permute.xlu1 %616 }
  0x88   :  { %1649 = vmatmul.mubr.msk.f32.gmra.mrb[2].mxu0 %vm346_vm2, %v43_v57  ;;  %v612_v9 = vpop.permute.xlu0 %611 }
  0x89   :  { %1651 = vmatprep.mubr.msk.f32.mxu0 %vm346_vm2, %v44_v54  ;;  %v622_v8 = vpop.permute.xlu1 %621 }
  0x8c   :  { %1652 = vmatmul.mubr.msk.f32.gmra.mrb[4].mxu0 %vm346_vm2, %v45_v58  ;;  %v627_v11 = vpop.permute.xlu0 %626 }
  0x8d   :  { %1654 = vmatprep.mubr.msk.f32.mxu0 %vm346_vm2, %v46_v59  ;;  %v632_v10 = vpop.permute.xlu1 %631 }
  0x90   :  { %1655 = vmatmul.mubr.msk.f32.gmra.mrb[6].mxu0 %vm346_vm2, %v47_v60  ;;  %v637_v20 = vpop.permute.xlu0 %636 }
  0x91   :  { %1657 = vmatprep.mubr.msk.f32.mxu0 %vm346_vm2, %v48_v61  ;;  %v642_v17 = vpop.permute.xlu1 %641 }
  0x94   :  { %1658 = vmatmul.mubr.msk.f32.gmra.mrb[8].mxu0 %vm346_vm2, %v49_v62  ;;  %v647_v33 = vpop.permute.xlu0 %646 }
  0x95   :  { %1660 = vmatprep.mubr.msk.f32.mxu0 %vm346_vm2, %v50_v63  ;;  %v652_v30 = vpop.permute.xlu1 %651 }
  0x98   :  { %1661 = vmatmul.mubr.msk.f32.gmra.mrb[10].mxu0 %vm346_vm2, %v51_v0  ;;  %v657_v45 = vpop.permute.xlu0 %656 }
  0x99   :  { %1663 = vmatprep.mubr.msk.f32.mxu0 %vm346_vm2, %v52_v1  ;;  %v662_v42 = vpop.permute.xlu1 %661 }
  0x9c   :  { %1664 = vmatmul.mubr.msk.f32.gmra.mrb[12].mxu0 %vm346_vm2, %v53_v2  ;;  %v667_v58 = vpop.permute.xlu0 %666 }
  0x9d   :  { %1666 = vmatprep.mubr.msk.f32.mxu0 %vm346_vm2, %v54_v3  ;;  %v672_v56 = vpop.permute.xlu1 %671 }
  0xa0   :  { %1667 = vmatmul.mubr.msk.f32.gmra.mrb[14].mxu0 %vm346_vm2, %v55_v4 }
  0xa1   :  { %v682_v3 = vpop.permute.xlu1 %681 }
 0x157   :  { %v1647_v12 = vpop.f32.mrb[0].mxu0 }
 0x158   :  { %v685_v13 = vadd.f32 %v1647_v12, %v612_v9  ;;  %v509_v14 = vpop.f32.mrb[1].mxu0 }
 0x159   :  { %v684_v15 = vadd.f32 %v607_v7, %v509_v14  ;;  %v717_v14 = vld [vmem:[%s2651_s5 + $0x8] sm:$0xff] }
 0x15a   :  { %v701_v16 = vmax.f32 %v685_v13, 0.0 }
 0x15b   :  { %v700_v18 = vmax.f32 %v684_v15, 0.0  ;;  %v1650_v19 = vpop.f32.mrb[2].mxu0  ;;  %v718_v15 = vld [vmem:[%s2651_s5 + $0x10] sm:$0xff] }
 0x15c   :  { %v687_v21 = vadd.f32 %v1650_v19, %v622_v8  ;;  %v519_v22 = vpop.f32.mrb[3].mxu0  ;;  %v722_v19 = vld [vmem:[%s2651_s5 + $0x30] sm:$0xff] }
 0x15d   :  { %v686_v23 = vadd.f32 %v617_v6, %v519_v22  ;;  %v1912_v24 = vpack.c.bf16 %v701_v16, %v700_v18  ;;  %v677_v6 = vpop.permute.xlu0 %676  ;;  %v719_v16 = vld [vmem:[%s2651_s5 + $0x18] sm:$0xff]  ;;  %v721_v18 = vld [vmem:[%s2651_s5 + $0x28] sm:$0xff] }
 0x15e   :  { %v703_v25 = vmax.f32 %v687_v21, 0.0  ;;  %v724_v21 = vld [vmem:[%s2651_s5 + $0x40] sm:$0xff]  ;;  %v725_v22 = vld [vmem:[%s2651_s5 + $0x48] sm:$0xff] }
 0x15f   :  { %v702_v26 = vmax.f32 %v686_v23, 0.0  ;;  %v1653_v27 = vpop.f32.mrb[4].mxu0  ;;  %1913 = vmatprep.subr.bf16.mxu1 %v1912_v24  ;;  %v726_v23 = vld [vmem:[%s2651_s5 + $0x50] sm:$0xff] }
 0x160   :  { %v689_v28 = vadd.f32 %v1653_v27, %v632_v10  ;;  %v529_v29 = vpop.f32.mrb[5].mxu0  ;;  %1915 = vmatpush3.bf16.msra.mxu1 %v1912_v24  ;;  %v727_v24 = vld [vmem:[%s2651_s5 + $0x58] sm:$0xff]  ;;  %v730_v27 = vld [vmem:[%s2651_s5 + $0x70] sm:$0xff] }
 0x161   :  { %v1916_v31 = vpack.c.bf16 %v703_v25, %v702_v26  ;;  %v688_v32 = vadd.f32 %v627_v11, %v529_v29  ;;  %v728_v25 = vld [vmem:[%s2651_s5 + $0x60] sm:$0xff]  ;;  %v729_v26 = vld [vmem:[%s2651_s5 + $0x68] sm:$0xff] }
 0x162   :  { %v705_v34 = vmax.f32 %v689_v28, 0.0  ;;  %v731_v28 = vld [vmem:[%s2651_s5 + $0x78] sm:$0xff]  ;;  %v989_v29 = vld [vmem:[%s2652_s7] sm:$0xff] }
 0x163   :  { %v704_v35 = vmax.f32 %v688_v32, 0.0  ;;  %v1656_v36 = vpop.f32.mrb[6].mxu0  ;;  %1917 = vmatprep.subr.bf16.mxu1 %v1916_v31 }
 0x164   :  { %v691_v37 = vadd.f32 %v1656_v36, %v642_v17  ;;  %v539_v38 = vpop.f32.mrb[7].mxu0  ;;  %1919 = vmatpush3.bf16.msra.mxu1 %v1916_v31  ;;  %v720_v17 = vld [vmem:[%s2651_s5 + $0x20] sm:$0xff]  ;;  %v751_v31 = vpop.permute.xlu0 %750 }
 0x165   :  { %v1920_v39 = vpack.c.bf16 %v705_v34, %v704_v35  ;;  %v690_v40 = vadd.f32 %v637_v20, %v539_v38  ;;  %v723_v20 = vld [vmem:[%s2651_s5 + $0x38] sm:$0xff] }
 0x166   :  { %v707_v41 = vmax.f32 %v691_v37, 0.0 }
 0x167   :  { %v706_v43 = vmax.f32 %v690_v40, 0.0  ;;  %v1659_v44 = vpop.f32.mrb[8].mxu0  ;;  %1921 = vmatprep.subr.bf16.mxu1 %v1920_v39 }
 0x168   :  { %v693_v46 = vadd.f32 %v1659_v44, %v652_v30  ;;  %v549_v47 = vpop.f32.mrb[9].mxu0  ;;  %1923 = vmatpush3.bf16.msra.mxu1 %v1920_v39  ;;  %v756_v30 = vpop.permute.xlu1 %755 }
 0x169   :  { %v1924_v48 = vpack.c.bf16 %v707_v41, %v706_v43  ;;  %v692_v49 = vadd.f32 %v647_v33, %v549_v47  ;;  %v761_v33 = vpop.permute.xlu0 %760 }
 0x16a   :  { %v709_v50 = vmax.f32 %v693_v46, 0.0 }
 0x16b   :  { %v708_v51 = vmax.f32 %v692_v49, 0.0  ;;  %v1662_v52 = vpop.f32.mrb[10].mxu0  ;;  %1925 = vmatprep.subr.bf16.mxu1 %v1924_v48 }
 0x16c   :  { %v695_v53 = vadd.f32 %v1662_v52, %v662_v42  ;;  %v559_v55 = vpop.f32.mrb[11].mxu0  ;;  %1927 = vmatpush3.bf16.msra.mxu1 %v1924_v48  ;;  %v766_v32 = vpop.permute.xlu1 %765 }
 0x16d   :  { %v1928_v57 = vpack.c.bf16 %v709_v50, %v708_v51  ;;  %v694_v54 = vadd.f32 %v657_v45, %v559_v55  ;;  %v771_v35 = vpop.permute.xlu0 %770 }
 0x16e   :  { %v711_v59 = vmax.f32 %v695_v53, 0.0 }
 0x16f   :  { %v710_v60 = vmax.f32 %v694_v54, 0.0  ;;  %v1665_v61 = vpop.f32.mrb[12].mxu0  ;;  %1929 = vmatprep.subr.bf16.mxu1 %v1928_v57 }
 0x170   :  { %v697_v62 = vadd.f32 %v1665_v61, %v672_v56  ;;  %v569_v63 = vpop.f32.mrb[13].mxu0  ;;  %1931 = vmatpush3.bf16.msra.mxu1 %v1928_v57  ;;  %v776_v34 = vpop.permute.xlu1 %775 }
 0x171   :  { %v1932_v0 = vpack.c.bf16 %v711_v59, %v710_v60  ;;  %v696_v1 = vadd.f32 %v667_v58, %v569_v63  ;;  %v781_v44 = vpop.permute.xlu0 %780 }
 0x172   :  { %v713_v2 = vmax.f32 %v697_v62, 0.0 }
 0x173   :  { %v712_v4 = vmax.f32 %v696_v1, 0.0  ;;  %v1668_v5 = vpop.f32.mrb[14].mxu0  ;;  %1933 = vmatprep.subr.bf16.mxu1 %v1932_v0 }
 0x174   :  { %v699_v7 = vadd.f32 %v1668_v5, %v682_v3  ;;  %v579_v8 = vpop.f32.mrb[15].mxu0  ;;  %1935 = vmatpush3.bf16.msra.mxu1 %v1932_v0  ;;  %v786_v41 = vpop.permute.xlu1 %785 }
 0x175   :  { %v1936_v9 = vpack.c.bf16 %v713_v2, %v712_v4  ;;  %v698_v10 = vadd.f32 %v677_v6, %v579_v8  ;;  %v791_v54 = vpop.permute.xlu0 %790 }
 0x176   :  { %v715_v11 = vmax.f32 %v699_v7, 0.0 }
 0x177   :  { %v714_v12 = vmax.f32 %v698_v10, 0.0  ;;  %1937 = vmatprep.subr.bf16.mxu1 %v1936_v9 }
 0x178   :  { %1939 = vmatpush3.bf16.msra.mxu1 %v1936_v9  ;;  %v796_v55 = vpop.permute.xlu1 %795 }
 0x179   :  { %v1940_v13 = vpack.c.bf16 %v715_v11, %v714_v12  ;;  %v801_v5 = vpop.permute.xlu0 %800 }
 0x17b   :  { %1941 = vmatprep.subr.bf16.mxu1 %v1940_v13 }
 0x17c   :  { %1943 = vmatpush3.bf16.msra.mxu1 %v1940_v13  ;;  %v806_v2 = vpop.permute.xlu1 %805 }
 0x17f   :  { %1702 = vmatmul.mubr.f32.vlgmr.msra.gmra.mrb[0].mxu1 %v717_v14 }
 0x180   :  { %1704 = vmatprep.mubr.f32.mxu1 %v718_v15  ;;  %v816_v15 = vpop.permute.xlu1 %815 }
 0x183   :  { %1705 = vmatmul.mubr.f32.gmra.mrb[2].mxu1 %v719_v16 }
 0x184   :  { %1707 = vmatprep.mubr.f32.mxu1 %v720_v17 }
 0x187   :  { %1708 = vmatmul.mubr.f32.gmra.mrb[4].mxu1 %v721_v18  ;;  %v811_v18 = vpop.permute.xlu0 %810 }
 0x188   :  { %1710 = vmatprep.mubr.f32.mxu1 %v722_v19 }
 0x18b   :  { %1711 = vmatmul.mubr.f32.gmra.mrb[6].mxu1 %v723_v20 }
 0x18c   :  { %1713 = vmatprep.mubr.f32.mxu1 %v724_v21 }
 0x18f   :  { %1714 = vmatmul.mubr.f32.gmra.mrb[8].mxu1 %v725_v22 }
 0x190   :  { %1716 = vmatprep.mubr.f32.mxu1 %v726_v23 }
 0x193   :  { %1717 = vmatmul.mubr.f32.gmra.mrb[10].mxu1 %v727_v24 }
 0x194   :  { %1719 = vmatprep.mubr.f32.mxu1 %v728_v25 }
 0x197   :  { %1720 = vmatmul.mubr.f32.gmra.mrb[12].mxu1 %v729_v26 }
 0x198   :  { %1722 = vmatprep.mubr.f32.mxu1 %v730_v27  ;;  %v826_v27 = vpop.permute.xlu1 %825 }
 0x19b   :  { %1723 = vmatmul.mubr.f32.gmra.mrb[14].mxu1 %v731_v28 }
 0x19c   :  { %1757 = vmatprep.mubr.f32.mxu1 %v989_v29 }
 0x252   :  { %v1703_v36 = vpop.f32.mrb[0].mxu1 }
 0x253   :  { %v900_v37 = vadd.f32 %v1703_v36, %v756_v30  ;;  %v894_v38 = vpop.f32.mrb[1].mxu1  ;;  %v821_v30 = vpop.permute.xlu0 %820 }
 0x254   :  { %v895_v39 = vadd.f32 %v894_v38, %v751_v31  ;;  %v990_v38 = vld [vmem:[%s2652_s7 + $0x8] sm:$0xff] }
 0x255   :  { %v974_v40 = vmax.f32 %v900_v37, 0.0 }
 0x256   :  { %v973_v42 = vmax.f32 %v895_v39, 0.0  ;;  %v1706_v43 = vpop.f32.mrb[2].mxu1  ;;  %v991_v39 = vld [vmem:[%s2652_s7 + $0x10] sm:$0xff] }
 0x257   :  { %v910_v45 = vadd.f32 %v1706_v43, %v766_v32  ;;  %v904_v46 = vpop.f32.mrb[3].mxu1  ;;  %v995_v43 = vld [vmem:[%s2652_s7 + $0x30] sm:$0xff] }
 0x258   :  { %v1944_v47 = vpack.c.bf16 %v974_v40, %v973_v42  ;;  %v905_v48 = vadd.f32 %v904_v46, %v761_v33  ;;  %v992_v40 = vld [vmem:[%s2652_s7 + $0x18] sm:$0xff]  ;;  %v994_v42 = vld [vmem:[%s2652_s7 + $0x28] sm:$0xff] }
 0x259   :  { %v976_v49 = vmax.f32 %v910_v45, 0.0  ;;  %v997_v45 = vld [vmem:[%s2652_s7 + $0x40] sm:$0xff]  ;;  %v998_v46 = vld [vmem:[%s2652_s7 + $0x48] sm:$0xff] }
 0x25a   :  { %v975_v50 = vmax.f32 %v905_v48, 0.0  ;;  %v1709_v51 = vpop.f32.mrb[4].mxu1  ;;  %1945 = vmatprep.subr.bf16.mxu1 %v1944_v47  ;;  %v1000_v48 = vld [vmem:[%s2652_s7 + $0x58] sm:$0xff] }
 0x25b   :  { %v920_v52 = vadd.f32 %v1709_v51, %v776_v34  ;;  %v914_v53 = vpop.f32.mrb[5].mxu1  ;;  %1947 = vmatpush3.bf16.msra.mxu1 %v1944_v47  ;;  %v999_v47 = vld [vmem:[%s2652_s7 + $0x50] sm:$0xff] }
 0x25c   :  { %v1948_v56 = vpack.c.bf16 %v976_v49, %v975_v50  ;;  %v915_v57 = vadd.f32 %v914_v53, %v771_v35  ;;  %v1001_v49 = vld [vmem:[%s2652_s7 + $0x60] sm:$0xff]  ;;  %v1002_v50 = vld [vmem:[%s2652_s7 + $0x68] sm:$0xff]  ;;  %v1003_v51 = vld [vmem:[%s2652_s7 + $0x70] sm:$0xff]  ;;  %v2023_v53 = vmov 0.0|0.0  }
 0x25d   :  { %v978_v58 = vmax.f32 %v920_v52, 0.0  ;;  %v1004_v52 = vld [vmem:[%s2652_s7 + $0x78] sm:$0xff] }
 0x25e   :  { %v977_v59 = vmax.f32 %v915_v57, 0.0  ;;  %v1712_v60 = vpop.f32.mrb[6].mxu1  ;;  %1949 = vmatprep.subr.bf16.mxu1 %v1948_v56  ;;  %v1024_v57 = vpop.permute.xlu0 %1023 }
 0x25f   :  { %v930_v61 = vadd.f32 %v1712_v60, %v786_v41  ;;  %v924_v62 = vpop.f32.mrb[7].mxu1  ;;  %1951 = vmatpush3.bf16.msra.mxu1 %v1948_v56  ;;  %v993_v41 = vld [vmem:[%s2652_s7 + $0x20] sm:$0xff]  ;;  %v1029_v56 = vpop.permute.xlu1 %1028 }
 0x260   :  { %v1952_v63 = vpack.c.bf16 %v978_v58, %v977_v59  ;;  %v925_v0 = vadd.f32 %v924_v62, %v781_v44  ;;  %v996_v44 = vld [vmem:[%s2652_s7 + $0x38] sm:$0xff] }
 0x261   :  { %v980_v1 = vmax.f32 %v930_v61, 0.0 }
 0x262   :  { %v979_v3 = vmax.f32 %v925_v0, 0.0  ;;  %v1715_v4 = vpop.f32.mrb[8].mxu1  ;;  %1953 = vmatprep.subr.bf16.mxu1 %v1952_v63  ;;  %v1034_v58 = vpop.permute.xlu0 %1033 }
 0x263   :  { %v940_v6 = vadd.f32 %v1715_v4, %v796_v55  ;;  %v934_v7 = vpop.f32.mrb[9].mxu1  ;;  %1955 = vmatpush3.bf16.msra.mxu1 %v1952_v63  ;;  %v2025_v55 = vmov 0.0  }
 0x264   :  { %v1956_v8 = vpack.c.bf16 %v980_v1, %v979_v3  ;;  %v935_v9 = vadd.f32 %v934_v7, %v791_v54  ;;  %v1039_v54 = vpop.permute.xlu1 %1038 }
 0x265   :  { %v982_v10 = vmax.f32 %v940_v6, 0.0 }
 0x266   :  { %v981_v11 = vmax.f32 %v935_v9, 0.0  ;;  %v1718_v12 = vpop.f32.mrb[10].mxu1  ;;  %1957 = vmatprep.subr.bf16.mxu1 %v1956_v8  ;;  %v1044_v60 = vpop.permute.xlu0 %1043 }
 0x267   :  { %v950_v13 = vadd.f32 %v1718_v12, %v806_v2  ;;  %v944_v14 = vpop.f32.mrb[11].mxu1  ;;  %1959 = vmatpush3.bf16.msra.mxu1 %v1956_v8 }
 0x268   :  { %v1960_v16 = vpack.c.bf16 %v982_v10, %v981_v11  ;;  %v945_v17 = vadd.f32 %v944_v14, %v801_v5  ;;  %v1049_v59 = vpop.permute.xlu1 %1048 }
 0x269   :  { %v984_v19 = vmax.f32 %v950_v13, 0.0 }
 0x26a   :  { %v983_v20 = vmax.f32 %v945_v17, 0.0  ;;  %v1721_v21 = vpop.f32.mrb[12].mxu1  ;;  %1961 = vmatprep.subr.bf16.mxu1 %v1960_v16  ;;  %v1054_v5 = vpop.permute.xlu0 %1053 }
 0x26b   :  { %v960_v22 = vadd.f32 %v1721_v21, %v816_v15  ;;  %v954_v23 = vpop.f32.mrb[13].mxu1  ;;  %1963 = vmatpush3.bf16.msra.mxu1 %v1960_v16 }
 0x26c   :  { %v1964_v24 = vpack.c.bf16 %v984_v19, %v983_v20  ;;  %v955_v25 = vadd.f32 %v954_v23, %v811_v18  ;;  %v1059_v2 = vpop.permute.xlu1 %1058 }
 0x26d   :  { %v986_v26 = vmax.f32 %v960_v22, 0.0 }
 0x26e   :  { %v985_v28 = vmax.f32 %v955_v25, 0.0  ;;  %v1724_v29 = vpop.f32.mrb[14].mxu1  ;;  %1965 = vmatprep.subr.bf16.mxu1 %v1964_v24  ;;  %v1064_v18 = vpop.permute.xlu0 %1063 }
 0x26f   :  { %v970_v31 = vadd.f32 %v1724_v29, %v826_v27  ;;  %v964_v32 = vpop.f32.mrb[15].mxu1  ;;  %1967 = vmatpush3.bf16.msra.mxu1 %v1964_v24 }
 0x270   :  { %v1968_v33 = vpack.c.bf16 %v986_v26, %v985_v28  ;;  %v965_v34 = vadd.f32 %v964_v32, %v821_v30  ;;  %v1069_v15 = vpop.permute.xlu1 %1068 }
 0x271   :  { %v988_v35 = vmax.f32 %v970_v31, 0.0 }
 0x272   :  { %v987_v36 = vmax.f32 %v965_v34, 0.0  ;;  %1969 = vmatprep.subr.bf16.mxu1 %v1968_v33  ;;  %v1074_v30 = vpop.permute.xlu0 %1073 }
 0x273   :  { %1971 = vmatpush3.bf16.msra.mxu1 %v1968_v33 }
 0x274   :  { %v1972_v37 = vpack.c.bf16 %v988_v35, %v987_v36  ;;  %v1079_v27 = vpop.permute.xlu1 %1078 }
 0x276   :  { %1973 = vmatprep.subr.bf16.mxu1 %v1972_v37 }
 0x277   :  { %1975 = vmatpush3.bf16.msra.mxu1 %v1972_v37 }
 0x278   :  { %1976 = vmatprep.subr.bf16.mxu1 %v2023_v53 }
 0x27a   :  { %1758 = vmatmul.mubr.f32.vlgmr.msra.gmra.mrb[16].mxu1 %v990_v38 }
 0x27b   :  { %1760 = vmatprep.mubr.f32.mxu1 %v991_v39 }
 0x27e   :  { %1761 = vmatmul.mubr.f32.gmra.mrb[18].mxu1 %v992_v40  ;;  %v1089_v40 = vpop.permute.xlu1 %1088 }
 0x27f   :  { %1763 = vmatprep.mubr.f32.mxu1 %v993_v41 }
 0x282   :  { %1764 = vmatmul.mubr.f32.gmra.mrb[20].mxu1 %v994_v42 }
 0x283   :  { %1766 = vmatprep.mubr.f32.mxu1 %v995_v43  ;;  %v1084_v43 = vpop.permute.xlu0 %1083 }
 0x286   :  { %1767 = vmatmul.mubr.f32.gmra.mrb[22].mxu1 %v996_v44 }
 0x287   :  { %1769 = vmatprep.mubr.f32.mxu1 %v997_v45 }
 0x28a   :  { %1770 = vmatmul.mubr.f32.gmra.mrb[24].mxu1 %v998_v46 }
 0x28b   :  { %1772 = vmatprep.mubr.f32.mxu1 %v999_v47 }
 0x28e   :  { %1773 = vmatmul.mubr.f32.gmra.mrb[26].mxu1 %v1000_v48 }
 0x28f   :  { %1775 = vmatprep.mubr.f32.mxu1 %v1001_v49 }
 0x292   :  { %1776 = vmatmul.mubr.f32.gmra.mrb[28].mxu1 %v1002_v50 }
 0x293   :  { %1778 = vmatprep.mubr.f32.mxu1 %v1003_v51 }
 0x296   :  { %1779 = vmatmul.mubr.f32.gmra.mrb[30].mxu1 %v1004_v52  ;;  %v1099_v52 = vpop.permute.xlu1 %1098 }
 0x297   :  { %1813 = vmatprep.mubr.msk.f32.mxu1 %vm2024_vm4, %v2025_v55 }
 0x34d   :  { %v1759_v61 = vpop.f32.mrb[16].mxu1 }
 0x34e   :  { %v1173_v62 = vadd.f32 %v1759_v61, %v1029_v56  ;;  %v1167_v63 = vpop.f32.mrb[17].mxu1 }
 0x34f   :  { %v1168_v0 = vadd.f32 %v1167_v63, %v1024_v57  ;;  %v1094_v57 = vpop.permute.xlu0 %1093 }
 0x350   :  { %v1247_v1 = vmax.f32 %v1173_v62, 0.0 }
 0x351   :  { %v1246_v3 = vmax.f32 %v1168_v0, 0.0  ;;  %v1762_v4 = vpop.f32.mrb[18].mxu1  ;;  %v1262_v0 = vld [vmem:[%s2653_s9] sm:$0x1] }
 0x352   :  { %v1183_v6 = vadd.f32 %v1762_v4, %v1039_v54  ;;  %v1177_v7 = vpop.f32.mrb[19].mxu1 }
 0x353   :  { %v1977_v8 = vpack.c.bf16 %v1247_v1, %v1246_v3  ;;  %v1178_v9 = vadd.f32 %v1177_v7, %v1034_v58  ;;  %v1269_v1 = vlaneseq  ;;  %v1267_v4 = vpop.permute.xlu0 %1266 }
 0x354   :  { %v1249_v10 = vmax.f32 %v1183_v6, 0.0 }
 0x355   :  { %v1248_v11 = vmax.f32 %v1178_v9, 0.0  ;;  %v1765_v12 = vpop.f32.mrb[20].mxu1  ;;  %1978 = vmatpush3.bf16.msra.mxu1 %v1977_v8 }
 0x356   :  { %v1193_v13 = vadd.f32 %v1765_v12, %v1049_v59  ;;  %v1187_v14 = vpop.f32.mrb[21].mxu1  ;;  %1979 = vmatprep.subr.bf16.mxu1 %v2023_v53 }
 0x357   :  { %v1980_v16 = vpack.c.bf16 %v1249_v10, %v1248_v11  ;;  %v1188_v17 = vadd.f32 %v1187_v14, %v1044_v60 }
 0x358   :  { %v1251_v19 = vmax.f32 %v1193_v13, 0.0 }
 0x359   :  { %v1250_v20 = vmax.f32 %v1188_v17, 0.0  ;;  %v1768_v21 = vpop.f32.mrb[22].mxu1  ;;  %1981 = vmatpush3.bf16.msra.mxu1 %v1980_v16 }
 0x35a   :  { %v1203_v22 = vadd.f32 %v1768_v21, %v1059_v2  ;;  %v1197_v23 = vpop.f32.mrb[23].mxu1  ;;  %1982 = vmatprep.subr.bf16.mxu1 %v2023_v53  ;;  %v1270_v2 = vshrl.u32 %v1269_v1, 7 }
 0x35b   :  { %v1983_v24 = vpack.c.bf16 %v1251_v19, %v1250_v20  ;;  %v1198_v25 = vadd.f32 %v1197_v23, %v1054_v5 }
 0x35c   :  { %v1253_v26 = vmax.f32 %v1203_v22, 0.0  ;;  %v1271_v3 = vsub.s32 0, %v1270_v2 }
 0x35d   :  { %v1252_v28 = vmax.f32 %v1198_v25, 0.0  ;;  %v1771_v29 = vpop.f32.mrb[24].mxu1  ;;  %1984 = vmatpush3.bf16.msra.mxu1 %v1983_v24 }
 0x35e   :  { %v1213_v31 = vadd.f32 %v1771_v29, %v1069_v15  ;;  %v1207_v32 = vpop.f32.mrb[25].mxu1  ;;  %1985 = vmatprep.subr.bf16.mxu1 %v2023_v53  ;;  %v1272_v5 = vrot.slane %v1267_v4, %v1271_v3 }
 0x35f   :  { %v1986_v33 = vpack.c.bf16 %v1253_v26, %v1252_v28  ;;  %v1208_v34 = vadd.f32 %v1207_v32, %v1064_v18 }
 0x360   :  { %v1255_v35 = vmax.f32 %v1213_v31, 0.0 }
 0x361   :  { %v1254_v36 = vmax.f32 %v1208_v34, 0.0  ;;  %v1774_v37 = vpop.f32.mrb[26].mxu1  ;;  %1987 = vmatpush3.bf16.msra.mxu1 %v1986_v33 }
 0x362   :  { %v1223_v38 = vadd.f32 %v1774_v37, %v1079_v27  ;;  %v1217_v39 = vpop.f32.mrb[27].mxu1  ;;  %1988 = vmatprep.subr.bf16.mxu1 %v2023_v53 }
 0x363   :  { %v1989_v41 = vpack.c.bf16 %v1255_v35, %v1254_v36  ;;  %v1218_v42 = vadd.f32 %v1217_v39, %v1074_v30 }
 0x364   :  { %v1257_v44 = vmax.f32 %v1223_v38, 0.0 }
 0x365   :  { %v1256_v45 = vmax.f32 %v1218_v42, 0.0  ;;  %v1777_v46 = vpop.f32.mrb[28].mxu1  ;;  %1990 = vmatpush3.bf16.msra.mxu1 %v1989_v41 }
 0x366   :  { %v1233_v47 = vadd.f32 %v1777_v46, %v1089_v40  ;;  %v1227_v48 = vpop.f32.mrb[29].mxu1  ;;  %1991 = vmatprep.subr.bf16.mxu1 %v2023_v53 }
 0x367   :  { %v1992_v49 = vpack.c.bf16 %v1257_v44, %v1256_v45  ;;  %v1228_v50 = vadd.f32 %v1227_v48, %v1084_v43 }
 0x368   :  { %v1259_v51 = vmax.f32 %v1233_v47, 0.0 }
 0x369   :  { %v1258_v55 = vmax.f32 %v1228_v50, 0.0  ;;  %v1780_v56 = vpop.f32.mrb[30].mxu1  ;;  %1993 = vmatpush3.bf16.msra.mxu1 %v1992_v49 }
 0x36a   :  { %v1243_v54 = vadd.f32 %v1780_v56, %v1099_v52  ;;  %v1237_v58 = vpop.f32.mrb[31].mxu1  ;;  %1994 = vmatprep.subr.bf16.mxu1 %v2023_v53 }
 0x36b   :  { %v1995_v59 = vpack.c.bf16 %v1259_v51, %v1258_v55  ;;  %v1238_v60 = vadd.f32 %v1237_v58, %v1094_v57 }
 0x36c   :  { %v1261_v61 = vmax.f32 %v1243_v54, 0.0 }
 0x36d   :  { %v1260_v62 = vmax.f32 %v1238_v60, 0.0  ;;  %1996 = vmatpush3.bf16.msra.mxu1 %v1995_v59 }
 0x36e   :  { %1997 = vmatprep.subr.bf16.mxu1 %v2023_v53 }
 0x36f   :  { %v1998_v63 = vpack.c.bf16 %v1261_v61, %v1260_v62 }
 0x371   :  { %1999 = vmatpush3.bf16.msra.mxu1 %v1998_v63 }
 0x374   :  { %1814 = vmatmul.mubr.f32.vlgmr.msra.gmra.mrb[32].mxu1 %v1262_v0 }
 0x447   :  { %v1339_v6 = vpop.f32.mrb[32].mxu1 }
 0x448   :  { %v1340_v7 = vadd.f32 %v1339_v6, %v1272_v5  ;;  %v1815_v8 = vpop.f32.mrb[33].mxu1 }
 0x44a   :  { %1343 = vst [vmem:[%s2654_s11] sm:$0x1] %v1340_v7 }

</bundles_post_ra>
